<compile_context>
chip_gen: v7x
topology: tpu7x:2x2x1
jax: 0.10.0
libtpu: 0.0.40
codegen_flags: <defaults>
</compile_context>

<pallas_src>
import jax
import jax.numpy as jnp
from jax.experimental import pallas as pl
from jax.experimental.pallas import tpu as pltpu


_LANES = 128            # vreg lane width -> lane-dense output last dim
_MAX_TILE_ROWS = 512    # 512*128*4B = 256 KiB/buffer; in+out double-buffered
                        # ~1 MiB total: far under every generation's VMEM budget
                        # while big enough to amortize the ~0.35us/step overhead.


def _scale_kernel(s_ref, x_ref, o_ref):
    """o = x * s.  s_ref: (1,) f32 scalar in SMEM; x_ref/o_ref: (tile, 128) VMEM."""
    y = x_ref[...].astype(jnp.float32) * s_ref[0]
    o_ref[...] = y.astype(o_ref.dtype)


def scale_forward(x, scale):
    """Pallas equivalent of Scale.forward: returns x * scale (learnable scalar)."""
    orig_shape = x.shape
    orig_dtype = x.dtype
    total = x.size

    # ---- flatten to a lane-dense (rows_padded, 128) slab (static shape math) ----
    rows = -(-total // _LANES)                                   # ceil
    tile_rows = min(_MAX_TILE_ROWS, ((rows + 7) // 8) * 8)       # multiple of 8 sublanes
    rows_padded = -(-rows // tile_rows) * tile_rows              # multiple of tile
    pad = rows_padded * _LANES - total
    x2d = jnp.pad(x.reshape(-1), (0, pad)).reshape(rows_padded, _LANES)

    grid = (rows_padded // tile_rows,)
    s = jnp.asarray(scale, jnp.float32).reshape(1)               # scalar param -> SMEM

    y2d = pl.pallas_call(
        _scale_kernel,
        grid=grid,
        out_shape=jax.ShapeDtypeStruct((rows_padded, _LANES), orig_dtype),
        in_specs=[
            pl.BlockSpec(memory_space=pltpu.MemorySpace.SMEM),       # scalar param
            pl.BlockSpec((tile_rows, _LANES), lambda i: (i, 0)),     # activation tile
        ],
        out_specs=pl.BlockSpec((tile_rows, _LANES), lambda i: (i, 0)),
        compiler_params=pltpu.CompilerParams(
            dimension_semantics=("parallel",),          # megacore sharding on v7x
            vmem_limit_bytes=32 * 1024 * 1024,          # explicit, safe on v5e/v6e/v7x
        ),
        cost_estimate=pl.CostEstimate(
            flops=total,
            transcendentals=0,
            bytes_accessed=2 * total * jnp.dtype(orig_dtype).itemsize + 4,
        ),
    )(s, x2d)

    return y2d.reshape(-1)[:total].reshape(orig_shape)


# ----------------------------------- main -----------------------------------

if __name__ == "__main__":
    key = jax.random.PRNGKey(0)
    # Small shape consistent with the module's typical use (NCHW activation).
    x = jax.random.normal(key, (2, 4, 16, 16), jnp.float32)
    scale = jnp.asarray([2.0], jnp.float32)      # Scale(init_value=2.0) parameter

    scale_fn = jax.jit(scale_forward)
    y = scale_fn(x, scale)
    y = jax.block_until_ready(y)

    # Correctness vs. the reference semantics: input * scale
    ref = x * scale[0]
    assert y.shape == x.shape and y.dtype == x.dtype
    assert jnp.allclose(y, ref, rtol=0.0, atol=0.0), "mismatch vs reference"
    print("KERNEL_OK")
</pallas_src>

<mosaic_0001>
module attributes {stable_mosaic.version = 11 : i64} {
  func.func @_scale_kernel(%arg0: i32, %arg1: memref<1xf32, #tpu.memory_space<smem>>, %arg2: memref<16x128xf32, #tpu.memory_space<vmem>>, %arg3: memref<16x128xf32, #tpu.memory_space<vmem>>) attributes {dimension_semantics = [#tpu.dimension_semantics<parallel>], iteration_bounds = array<i64: 1>, scalar_prefetch = 0 : i64, scratch_operands = 0 : i64, tpu.core_type = #tpu.core_type<tc>, window_params = [{transform_indices = @transform_0, window_bounds = array<i64: 1>}, {transform_indices = @transform_1, window_bounds = array<i64: 16, 128>}, {transform_indices = @transform_2, window_bounds = array<i64: 16, 128>}]} {
    %c0 = arith.constant 0 : index
    %c0_0 = arith.constant 0 : index
    %0 = vector.load %arg2[%c0, %c0_0] : memref<16x128xf32, #tpu.memory_space<vmem>>, vector<16x128xf32>
    %c0_1 = arith.constant 0 : index
    %1 = memref.load %arg1[%c0_1] : memref<1xf32, #tpu.memory_space<smem>>
    %2 = vector.broadcast %1 : f32 to vector<16x128xf32>
    %3 = arith.mulf %0, %2 : vector<16x128xf32>
    %c0_2 = arith.constant 0 : index
    %c0_3 = arith.constant 0 : index
    %4 = vector.load %arg3[%c0_2, %c0_3] : memref<16x128xf32, #tpu.memory_space<vmem>>, vector<16x128xf32>
    tpu.vector_store %arg3[%c0_2, %c0_3], %3 {strides = array<i32>} : memref<16x128xf32, #tpu.memory_space<vmem>>, vector<16x128xf32>,
    return
  }
  func.func @transform_0(%arg0: i32) -> i32 {
    %c0_i32 = arith.constant 0 : i32
    %c0_i32_0 = arith.constant 0 : i32
    return %c0_i32 : i32
  }
  func.func @transform_1(%arg0: i32) -> (i32, i32) {
    %c0_i32 = arith.constant 0 : i32
    %c0_i32_0 = arith.constant 0 : i32
    return %arg0, %c0_i32 : i32, i32
  }
  func.func @transform_2(%arg0: i32) -> (i32, i32) {
    %c0_i32 = arith.constant 0 : i32
    %c0_i32_0 = arith.constant 0 : i32
    return %arg0, %c0_i32 : i32, i32
  }
}

</mosaic_0001>

<bundles_post_ra>
// kernel: scale_forward.1
= control target key start
LH: loop header
LB: loop body
LE: loop exit
PB: predicated region body
PF: predicated region fallthrough
CT: control target
= control target key end

     0   :  { %s54_s0 = inlined_call_operand.<no memory space> [shape: f32[1], index: 0, kind: input, shape index: {}]   ;;  %s55_s1 = inlined_call_operand.vmem [shape: f32[16,128], index: 1, kind: input, shape index: {}]   ;;  %s56_s2 = inlined_call_operand.vmem [shape: f32[16,128], index: 2, kind: output, shape index: {}]  }
   0x1   :  { %v12_v0 = vld [vmem:[%s55_s1] sm:$0xff]  ;;  %v15_v1 = vstv %s54_s0  ;;  %v13_v2 = vld [vmem:[%s55_s1 + $0x8] sm:$0xff] }
   0x2   :  { %v16_v3 = vmul.f32 %v15_v1, %v12_v0  ;;  %v17_v4 = vmul.f32 %v15_v1, %v13_v2 }
   0x4   :  { %18 = vst [vmem:[%s56_s2] sm:$0xff] %v16_v3  ;;  %19 = vst [vmem:[%s56_s2 + $0x8] sm:$0xff] %v17_v4 }

</bundles_post_ra>
